<compile_context>
chip_gen: v7x
topology: tpu7x:2x2x1
jax: 0.10.0
libtpu: 0.0.40
codegen_flags: <defaults>
</compile_context>

<pallas_src>
import functools

import jax
import jax.numpy as jnp
from jax.experimental import pallas as pl
from jax.experimental.pallas import tpu as pltpu


SE_REDUCTION = 4
_MIB = 1024 * 1024
# Target size for one streamed (1, C, T) x tile in the fallback path.
_STREAM_TILE_TARGET = 4 * _MIB


def make_divisible(v, divisor=8, min_value=None):
    if min_value is None:
        min_value = divisor
    new_v = max(min_value, int(v + divisor / 2) // divisor * divisor)
    if new_v < 0.9 * v:
        new_v += divisor
    return new_v


# ---------------------------------------------------------------------------
# Hardware-aware sizing
# ---------------------------------------------------------------------------


def _device_kind():
    try:
        return jax.devices()[0].device_kind.lower()
    except Exception:
        return ""


def _hw_config():
    """Returns (fused_slab_budget, vmem_limit_cap, multi_core_grid)."""
    kind = _device_kind()
    vmem_bytes = None
    try:
        info = pltpu.get_tpu_info()
        vmem_bytes = int(getattr(info, "vmem_capacity_bytes", 0)) or None
    except Exception:
        vmem_bytes = None
    if vmem_bytes is None:
        vmem_bytes = 64 * _MIB  # conservative default: v7x-sized VMEM
    if ("v7" in kind) or vmem_bytes < 96 * _MIB:
        # 64 MiB-per-TensorCore parts (v7x): right-size, leave compiler
        # headroom, and keep >=2 grid steps for the two TensorCores.
        return 10 * _MIB, 52 * _MIB, True
    # 128 MiB-VMEM parts (v5e / v6e): keep big slabs fused so x is read once.
    return 24 * _MIB, 110 * _MIB, False


def _vmem_limit(x_tile_bytes, w_bytes, cap):
    # in + out double-buffered x tiles, (conservatively) double-buffered
    # weights, plus headroom for gate vectors / compiler scratch.
    need = 4 * x_tile_bytes + 4 * w_bytes + (4 * _MIB)
    return int(min(max(need, 16 * _MIB), cap))


def _pick_spatial_tile(hw, c, itemsize, target_bytes):
    """Lane-aligned spatial tile T (multiple of 128, T <= HW); HW need not divide."""
    if hw <= 128:
        return int(hw)
    t = (target_bytes // max(1, c * itemsize)) // 128 * 128
    t = max(128, min(int(t), (hw // 128) * 128))
    return int(t)


# ---------------------------------------------------------------------------
# Kernels
# ---------------------------------------------------------------------------


def _se_fused_kernel(x_ref, w1_ref, b1_ref, w2_ref, b2_ref, o_ref, *,
                     inv_hw, low_precision_scale):
    """Single-pass SE on a fully resident slab.

    x_ref / o_ref: (Nb, C, HW);  w1_ref: (C, M);  b1_ref: (1, M);
    w2_ref: (M, C);  b2_ref: (1, C).
    """
    # Squeeze: pool straight from the ref (f32 accumulation); no full f32
    # copy of the slab is kept live across the MLP.
    pooled = jnp.sum(x_ref[...].astype(jnp.float32), axis=2) * inv_hw   # (Nb, C)

    # Excite: lane-dense row-vector MLP (the two 1x1 convs).
    h = jnp.dot(pooled, w1_ref[...], preferred_element_type=jnp.float32) + b1_ref[...]
    h = jnp.maximum(h, 0.0)                                             # ReLU
    s = jnp.dot(h, w2_ref[...], preferred_element_type=jnp.float32) + b2_ref[...]
    s = jnp.clip(s + 3.0, 0.0, 6.0) * (1.0 / 6.0)                       # Hsigmoid (Nb, C)

    # Scale: re-read x_ref at the store; bf16 multiply on bf16-capable VPUs.
    if low_precision_scale:
        o_ref[...] = x_ref[...] * s.astype(o_ref.dtype)[:, :, None]
    else:
        o_ref[...] = (x_ref[...].astype(jnp.float32) * s[:, :, None]).astype(o_ref.dtype)


def _se_streaming_kernel(x_ref, w1_ref, b1_ref, w2_ref, b2_ref, o_ref, acc_ref, *,
                         hw, tile_hw, inv_hw, low_precision_scale):
    """Fused streaming fallback.  Grid = (N, 2, n_t).

    Pass p=0: accumulate the spatial sum over HW tiles (ragged last tile is
    masked) and, on the last tile, run the gate MLP into acc_ref (VMEM).
    Pass p=1: re-stream the same HW tiles and write the scaled output.

    x_ref / o_ref: (1, C, T);  acc_ref: (1, C) f32 scratch.
    """
    p = pl.program_id(1)
    t = pl.program_id(2)
    n_t = pl.num_programs(2)

    @pl.when(p == 0)
    def _pool_and_gate():
        @pl.when(t == 0)
        def _init():
            acc_ref[...] = jnp.zeros_like(acc_ref)

        xt = x_ref[...].astype(jnp.float32)                       # (1, C, T)
        valid = hw - t * tile_hw                                  # may exceed T
        lane = jax.lax.broadcasted_iota(jnp.int32, (1, 1, tile_hw), 2)
        xt = jnp.where(lane < valid, xt, 0.0)                     # mask padded lanes
        acc_ref[...] += jnp.sum(xt, axis=2)                       # (1, C)

        @pl.when(t == n_t - 1)
        def _gate():
            pooled = acc_ref[...] * inv_hw                        # (1, C)
            h = jnp.dot(pooled, w1_ref[...],
                        preferred_element_type=jnp.float32) + b1_ref[...]
            h = jnp.maximum(h, 0.0)
            s = jnp.dot(h, w2_ref[...],
                        preferred_element_type=jnp.float32) + b2_ref[...]
            acc_ref[...] = jnp.clip(s + 3.0, 0.0, 6.0) * (1.0 / 6.0)

    @pl.when(p == 1)
    def _scale():
        if low_precision_scale:
            g = acc_ref[...].astype(o_ref.dtype)[:, :, None]      # (1, C, 1)
            o_ref[...] = x_ref[...] * g
        else:
            o_ref[...] = (x_ref[...].astype(jnp.float32)
                          * acc_ref[...][:, :, None]).astype(o_ref.dtype)


# ---------------------------------------------------------------------------
# Wrapper
# ---------------------------------------------------------------------------


def se_module_forward(x, w1, b1, w2, b2, *, x_tile_budget_bytes=None):
    """SE forward.  x: (N, C, H, W); w1: (M, C); b1: (M,); w2: (C, M); b2: (C,).

    Output: (N, C, H, W) in x.dtype.  Pooling / gate MLP math is always f32.
    """
    N, C, H, W = x.shape
    HW = H * W
    M = w1.shape[0]
    itemsize = jnp.dtype(x.dtype).itemsize

    fused_budget, limit_cap, multi_core_grid = _hw_config()
    if x_tile_budget_bytes is not None:
        fused_budget = int(x_tile_budget_bytes)
    stream_target = min(_STREAM_TILE_TARGET, fused_budget)

    low_precision_scale = (jnp.dtype(x.dtype) == jnp.dtype(jnp.bfloat16)
                           and "v5" not in _device_kind())

    # Free relayout: NCHW -> (N, C, HW).  No HBM transposes.
    x_k = x.reshape(N, C, HW)

    # Lane-dense weight layout: (C, M) / (M, C) matrices, (1, M) / (1, C) biases.
    w1t = jnp.asarray(w1, jnp.float32).T.reshape(C, M)
    w2t = jnp.asarray(w2, jnp.float32).T.reshape(M, C)
    b1r = jnp.asarray(b1, jnp.float32).reshape(1, M)
    b2r = jnp.asarray(b2, jnp.float32).reshape(1, C)
    w_bytes = (C * M + M + M * C + C) * 4

    slab_bytes = C * HW * itemsize
    inv_hw = 1.0 / float(HW)

    if slab_bytes <= fused_budget:
        # ---- Single fused kernel: Nb full slabs resident per grid step. ----
        max_nb = max(1, fused_budget // slab_bytes)
        if multi_core_grid and N >= 2:
            max_nb = max(1, min(max_nb, N // 2))   # >=2 steps for 2 TCs (v7x)
        nb = max(d for d in range(1, N + 1) if N % d == 0 and d <= max_nb)
        x_tile_bytes = nb * slab_bytes
        blk = (nb, C, HW)

        out_k = pl.pallas_call(
            functools.partial(_se_fused_kernel, inv_hw=inv_hw,
                              low_precision_scale=low_precision_scale),
            out_shape=jax.ShapeDtypeStruct(x_k.shape, x.dtype),
            grid_spec=pltpu.PrefetchScalarGridSpec(
                num_scalar_prefetch=0,
                grid=(N // nb,),
                in_specs=[
                    pl.BlockSpec(blk, lambda n: (n, 0, 0)),
                    pl.BlockSpec((C, M), lambda n: (0, 0)),
                    pl.BlockSpec((1, M), lambda n: (0, 0)),
                    pl.BlockSpec((M, C), lambda n: (0, 0)),
                    pl.BlockSpec((1, C), lambda n: (0, 0)),
                ],
                out_specs=pl.BlockSpec(blk, lambda n: (n, 0, 0)),
            ),
            compiler_params=pltpu.CompilerParams(
                dimension_semantics=("parallel",),
                vmem_limit_bytes=_vmem_limit(x_tile_bytes, w_bytes, limit_cap),
            ),
        )(x_k, w1t, b1r, w2t, b2r)
    else:
        # ---- Fused streaming fallback: grid (N, 2, n_t). ----
        # x is read twice (unavoidable when the slab doesn't fit); gates stay
        # in a VMEM scratch, no intermediate HBM round trip, one launch.
        T = _pick_spatial_tile(HW, C, itemsize, stream_target)
        n_t = pl.cdiv(HW, T)
        tile_bytes = C * T * itemsize

        x_spec = pl.BlockSpec((1, C, T), lambda n, p, t: (n, 0, t))
        # Output block index stays at (n,0,0) during the pooling pass (p=0)
        # and only advances during the scale pass, so every output block is
        # written back exactly once, after correct data has been stored.
        o_spec = pl.BlockSpec((1, C, T), lambda n, p, t: (n, 0, t * p))
        w_specs = [
            pl.BlockSpec((C, M), lambda n, p, t: (0, 0)),
            pl.BlockSpec((1, M), lambda n, p, t: (0, 0)),
            pl.BlockSpec((M, C), lambda n, p, t: (0, 0)),
            pl.BlockSpec((1, C), lambda n, p, t: (0, 0)),
        ]

        out_k = pl.pallas_call(
            functools.partial(_se_streaming_kernel, hw=HW, tile_hw=T,
                              inv_hw=inv_hw,
                              low_precision_scale=low_precision_scale),
            out_shape=jax.ShapeDtypeStruct(x_k.shape, x.dtype),
            grid_spec=pltpu.PrefetchScalarGridSpec(
                num_scalar_prefetch=0,
                grid=(N, 2, n_t),
                in_specs=[x_spec] + w_specs,
                out_specs=o_spec,
                scratch_shapes=[pltpu.VMEM((1, C), jnp.float32)],
            ),
            compiler_params=pltpu.CompilerParams(
                dimension_semantics=("parallel", "arbitrary", "arbitrary"),
                vmem_limit_bytes=_vmem_limit(tile_bytes, w_bytes, limit_cap),
            ),
        )(x_k, w1t, b1r, w2t, b2r)

    return out_k.reshape(N, C, H, W)


# ---------------------------------------------------------------------------
# Reference & test
# ---------------------------------------------------------------------------


def se_reference(x, w1, b1, w2, b2):
    """Pure-JAX reference mirroring the PyTorch forward (f32)."""
    xf = x.astype(jnp.float32)
    y = jnp.mean(xf, axis=(2, 3), keepdims=True)                      # (N, C, 1, 1)
    y = jnp.einsum("mc,ncij->nmij", w1, y) + b1[None, :, None, None]
    y = jnp.maximum(y, 0.0)
    y = jnp.einsum("cm,nmij->ncij", w2, y) + b2[None, :, None, None]
    y = jnp.clip(y + 3.0, 0.0, 6.0) / 6.0
    return xf * y


def _make_params(key, C, scale=0.1):
    M = make_divisible(C // SE_REDUCTION, divisor=8)
    k1, kb1, k2, kb2 = jax.random.split(key, 4)
    w1 = jax.random.normal(k1, (M, C), dtype=jnp.float32) * scale
    b1 = jax.random.normal(kb1, (M,), dtype=jnp.float32) * scale
    w2 = jax.random.normal(k2, (C, M), dtype=jnp.float32) * scale
    b2 = jax.random.normal(kb2, (C,), dtype=jnp.float32) * scale
    return w1, b1, w2, b2


if __name__ == "__main__":
    key = jax.random.PRNGKey(0)

    # 1) Small shape consistent with the module: batch=2, channels=4, spatial=16.
    N, C, H, W = 2, 4, 16, 16
    kx, kp = jax.random.split(key)
    x = jax.random.normal(kx, (N, C, H, W), dtype=jnp.float32)
    w1, b1, w2, b2 = _make_params(kp, C)
    ref = se_reference(x, w1, b1, w2, b2)

    out = jax.block_until_ready(se_module_forward(x, w1, b1, w2, b2))
    assert out.shape == (N, C, H, W)
    assert jnp.allclose(out, ref, atol=1e-5, rtol=1e-5), "fused path mismatch"

    # 2) Forced streaming fallback (pool pass + scale pass in one call),
    #    128-lane spatial tiles, exact tile boundary.
    out_fb = jax.block_until_ready(
        se_module_forward(x, w1, b1, w2, b2, x_tile_budget_bytes=2048))
    assert jnp.allclose(out_fb, ref, atol=1e-5, rtol=1e-5), "fallback mismatch"

    # 3) Ragged HW (169 = 13*13, not a multiple of 128) exercises the masked
    #    partial last tile of the streaming pool pass.
    C3, H3, W3 = 8, 13, 13
    kx3, kp3 = jax.random.split(jax.random.PRNGKey(2))
    x3 = jax.random.normal(kx3, (N, C3, H3, W3), dtype=jnp.float32)
    p3 = _make_params(kp3, C3)
    out3 = jax.block_until_ready(
        se_module_forward(x3, *p3, x_tile_budget_bytes=2048))
    ref3 = se_reference(x3, *p3)
    assert jnp.allclose(out3, ref3, atol=1e-5, rtol=1e-5), "ragged fallback mismatch"

    # 4) bf16 streaming input (gate math stays f32 in-kernel).
    out_bf16 = jax.block_until_ready(
        se_module_forward(x.astype(jnp.bfloat16), w1, b1, w2, b2))
    assert out_bf16.dtype == jnp.bfloat16
    assert jnp.allclose(out_bf16.astype(jnp.float32), ref, atol=0.1, rtol=0.1), \
        "bf16 path mismatch"

    # 5) Channel-heavy / small-spatial SE block (C=256, HW=49) — now handled
    #    without any wrapper transposes, both fused and forced-streaming.
    C5, H5, W5 = 256, 7, 7
    kx5, kp5 = jax.random.split(jax.random.PRNGKey(1))
    x5 = jax.random.normal(kx5, (N, C5, H5, W5), dtype=jnp.float32)
    p5 = _make_params(kp5, C5, scale=0.05)
    ref5 = se_reference(x5, *p5)
    out5 = jax.block_until_ready(se_module_forward(x5, *p5))
    assert jnp.allclose(out5, ref5, atol=1e-4, rtol=1e-4), "channel-heavy mismatch"
    out5s = jax.block_until_ready(
        se_module_forward(x5, *p5, x_tile_budget_bytes=2048))
    assert jnp.allclose(out5s, ref5, atol=1e-4, rtol=1e-4), \
        "channel-heavy streaming mismatch"

    print("KERNEL_OK")
</pallas_src>

<mosaic_0001>
module attributes {stable_mosaic.version = 11 : i64} {
  func.func @_se_fused_kernel(%arg0: i32, %arg1: memref<1x4x256xf32, #tpu.memory_space<vmem>>, %arg2: memref<4x8xf32, #tpu.memory_space<vmem>>, %arg3: memref<1x8xf32, #tpu.memory_space<vmem>>, %arg4: memref<8x4xf32, #tpu.memory_space<vmem>>, %arg5: memref<1x4xf32, #tpu.memory_space<vmem>>, %arg6: memref<1x4x256xf32, #tpu.memory_space<vmem>>) attributes {dimension_semantics = [#tpu.dimension_semantics<parallel>], iteration_bounds = array<i64: 2>, scalar_prefetch = 0 : i64, scratch_operands = 0 : i64, tpu.core_type = #tpu.core_type<tc>, window_params = [{transform_indices = @transform_0, window_bounds = array<i64: 1, 4, 256>}, {pipeline_mode = #tpu.pipeline_mode<synchronous>, transform_indices = @transform_1, window_bounds = array<i64: 4, 8>}, {pipeline_mode = #tpu.pipeline_mode<synchronous>, transform_indices = @transform_2, window_bounds = array<i64: 1, 8>}, {pipeline_mode = #tpu.pipeline_mode<synchronous>, transform_indices = @transform_3, window_bounds = array<i64: 8, 4>}, {pipeline_mode = #tpu.pipeline_mode<synchronous>, transform_indices = @transform_4, window_bounds = array<i64: 1, 4>}, {transform_indices = @transform_5, window_bounds = array<i64: 1, 4, 256>}]} {
    %c0 = arith.constant 0 : index
    %c0_0 = arith.constant 0 : index
    %c0_1 = arith.constant 0 : index
    %0 = vector.load %arg1[%c0, %c0_0, %c0_1] : memref<1x4x256xf32, #tpu.memory_space<vmem>>, vector<1x4x256xf32>
    %cst = arith.constant dense<0.000000e+00> : vector<1x4xf32>
    %1 = vector.multi_reduction <add>, %0, %cst [2] : vector<1x4x256xf32> to vector<1x4xf32>
    %cst_2 = arith.constant 3.906250e-03 : f32
    %2 = vector.broadcast %cst_2 : f32 to vector<1x4xf32>
    %3 = arith.mulf %1, %2 : vector<1x4xf32>
    %c0_3 = arith.constant 0 : index
    %c0_4 = arith.constant 0 : index
    %4 = vector.load %arg2[%c0_3, %c0_4] : memref<4x8xf32, #tpu.memory_space<vmem>>, vector<4x8xf32>
    %cst_5 = arith.constant dense<0.000000e+00> : vector<1x8xf32>
    %5 = tpu.matmul %3, %4, %cst_5 {dimension_numbers = #tpu.dot_dimension_numbers<[1], [0], [0], [1], [0, 0, 1, 1], [], []>} : vector<1x4xf32>, vector<4x8xf32>, vector<1x8xf32> -> vector<1x8xf32>
    %c0_6 = arith.constant 0 : index
    %c0_7 = arith.constant 0 : index
    %6 = vector.load %arg3[%c0_6, %c0_7] : memref<1x8xf32, #tpu.memory_space<vmem>>, vector<1x8xf32>
    %7 = arith.addf %5, %6 : vector<1x8xf32>
    %cst_8 = arith.constant 0.000000e+00 : f32
    %8 = vector.broadcast %cst_8 : f32 to vector<1x8xf32>
    %9 = arith.maximumf %7, %8 : vector<1x8xf32>
    %c0_9 = arith.constant 0 : index
    %c0_10 = arith.constant 0 : index
    %10 = vector.load %arg4[%c0_9, %c0_10] : memref<8x4xf32, #tpu.memory_space<vmem>>, vector<8x4xf32>
    %cst_11 = arith.constant dense<0.000000e+00> : vector<1x4xf32>
    %11 = tpu.matmul %9, %10, %cst_11 {dimension_numbers = #tpu.dot_dimension_numbers<[1], [0], [0], [1], [0, 0, 1, 1], [], []>} : vector<1x8xf32>, vector<8x4xf32>, vector<1x4xf32> -> vector<1x4xf32>
    %c0_12 = arith.constant 0 : index
    %c0_13 = arith.constant 0 : index
    %12 = vector.load %arg5[%c0_12, %c0_13] : memref<1x4xf32, #tpu.memory_space<vmem>>, vector<1x4xf32>
    %13 = arith.addf %11, %12 : vector<1x4xf32>
    %cst_14 = arith.constant 3.000000e+00 : f32
    %14 = vector.broadcast %cst_14 : f32 to vector<1x4xf32>
    %15 = arith.addf %13, %14 : vector<1x4xf32>
    %cst_15 = arith.constant 0.000000e+00 : f32
    %cst_16 = arith.constant 6.000000e+00 : f32
    %16 = vector.broadcast %cst_15 : f32 to vector<1x4xf32>
    %17 = arith.maximumf %16, %15 : vector<1x4xf32>
    %18 = vector.broadcast %cst_16 : f32 to vector<1x4xf32>
    %19 = arith.minimumf %18, %17 : vector<1x4xf32>
    %cst_17 = arith.constant 0.166666672 : f32
    %20 = vector.broadcast %cst_17 : f32 to vector<1x4xf32>
    %21 = arith.mulf %19, %20 : vector<1x4xf32>
    %c0_18 = arith.constant 0 : index
    %c0_19 = arith.constant 0 : index
    %c0_20 = arith.constant 0 : index
    %22 = vector.load %arg1[%c0_18, %c0_19, %c0_20] : memref<1x4x256xf32, #tpu.memory_space<vmem>>, vector<1x4x256xf32>
    %23 = vector.shape_cast %21 : vector<1x4xf32> to vector<1x4x1xf32>
    %24 = vector.broadcast %23 : vector<1x4x1xf32> to vector<1x4x256xf32>
    %25 = arith.mulf %22, %24 : vector<1x4x256xf32>
    %c0_21 = arith.constant 0 : index
    %c0_22 = arith.constant 0 : index
    %c0_23 = arith.constant 0 : index
    %26 = vector.load %arg6[%c0_21, %c0_22, %c0_23] : memref<1x4x256xf32, #tpu.memory_space<vmem>>, vector<1x4x256xf32>
    tpu.vector_store %arg6[%c0_21, %c0_22, %c0_23], %25 {strides = array<i32>} : memref<1x4x256xf32, #tpu.memory_space<vmem>>, vector<1x4x256xf32>,
    return
  }
  func.func @transform_0(%arg0: i32) -> (i32, i32, i32) {
    %c0_i32 = arith.constant 0 : i32
    %c0_i32_0 = arith.constant 0 : i32
    %c0_i32_1 = arith.constant 0 : i32
    return %arg0, %c0_i32, %c0_i32_0 : i32, i32, i32
  }
  func.func @transform_1(%arg0: i32) -> (i32, i32) {
    %c0_i32 = arith.constant 0 : i32
    %c0_i32_0 = arith.constant 0 : i32
    %c0_i32_1 = arith.constant 0 : i32
    return %c0_i32, %c0_i32_0 : i32, i32
  }
  func.func @transform_2(%arg0: i32) -> (i32, i32) {
    %c0_i32 = arith.constant 0 : i32
    %c0_i32_0 = arith.constant 0 : i32
    %c0_i32_1 = arith.constant 0 : i32
    return %c0_i32, %c0_i32_0 : i32, i32
  }
  func.func @transform_3(%arg0: i32) -> (i32, i32) {
    %c0_i32 = arith.constant 0 : i32
    %c0_i32_0 = arith.constant 0 : i32
    %c0_i32_1 = arith.constant 0 : i32
    return %c0_i32, %c0_i32_0 : i32, i32
  }
  func.func @transform_4(%arg0: i32) -> (i32, i32) {
    %c0_i32 = arith.constant 0 : i32
    %c0_i32_0 = arith.constant 0 : i32
    %c0_i32_1 = arith.constant 0 : i32
    return %c0_i32, %c0_i32_0 : i32, i32
  }
  func.func @transform_5(%arg0: i32) -> (i32, i32, i32) {
    %c0_i32 = arith.constant 0 : i32
    %c0_i32_0 = arith.constant 0 : i32
    %c0_i32_1 = arith.constant 0 : i32
    return %arg0, %c0_i32, %c0_i32_0 : i32, i32, i32
  }
}

</mosaic_0001>

<bundles_post_ra>
// kernel: tpu_custom_call.1
= control target key start
LH: loop header
LB: loop body
LE: loop exit
PB: predicated region body
PF: predicated region fallthrough
CT: control target
= control target key end

     0   :  { %10 = vsyncpa [#allocation3], 0  ;;  %s914_s0 = inlined_call_operand.hbm [shape: f32[2,4,256], index: 0, kind: input, shape index: {}]   ;;  %s915_s1 = inlined_call_operand.vmem [shape: f32[4,8], index: 1, kind: input, shape index: {}]   ;;  %s916_s2 = inlined_call_operand.vmem [shape: f32[1,8], index: 2, kind: input, shape index: {}]   ;;  %s917_s3 = inlined_call_operand.vmem [shape: f32[8,4], index: 3, kind: input, shape index: {}]   ;;  %s918_s4 = inlined_call_operand.vmem [shape: f32[1,4], index: 4, kind: input, shape index: {}]   ;;  %s919_s5 = inlined_call_operand.hbm [shape: f32[2,4,256], index: 5, kind: output, shape index: {}]  }
   0x1   :  { %12 = vsyncpa [#allocation3 + $0x1], 0 }
   0x2   :  { %13 = vsyncpa [#allocation4], 0 }
   0x3   :  { %15 = vsyncpa [#allocation4 + $0x1], 0  ;;  %s737_s18 = smov 0   ;;  %s739_s19 = smov 0  }
   0x4   :  { %s741_s20 = smov 0   ;;  %s743_s21 = smov 0  }
   0x5 LB: > { %s758_s22 = sadd.s32 4294967295, %s700_s21   ;;  %s521_s23 = sadd.s32 4294967294, %s700_s21   ;;  %s700_s21 = sphi %s743_s21, %s934_s21   ;;  %s696_s20 = sphi %s741_s20, %s933_s20   ;;  %s692_s19 = sphi %s739_s19, %s932_s19   ;;  %s688_s18 = sphi %s737_s18, %s931_s18  }
   0x6   : > { %s762_s24 = sadd.s32 1, %s700_s21   ;;  %s28_s25 = sadd.s32 1, %s696_s20 }
   0x7   : > { %s25_s26 = ssub.s32 %s700_s21, %s762_s24  ;;  %p35_p0 = scmp.ne.s32.totalorder %s696_s20, %s692_s19 }
   0x8   : > { %p26_p1 = scmp.eq.s32.totalorder %s25_s26, 0  ;;  %p36_p2 = scmp.eq.s32.totalorder %s700_s21, 0 }
   0x9   : > { %p41_p3 = scmp.ne.s32.totalorder %s692_s19, %s688_s18  ;;  %p42_p4 = scmp.eq.s32.totalorder %s758_s22, 0 }
   0xa   : > { %s774_s27 = scalar_select %p26_p1, %s696_s20, %s28_s25  }
   0xb   : > { %p776_p5 = por %p36_p2, %p35_p0  ;;  %p780_p6 = por %p42_p4, %p41_p3 }
   0xc   : > { %p149_p7 = scmp.eq.s32.totalorder %s758_s22, 1  ;;  %p155_p8 = scmp.eq.s32.totalorder %s521_s23, 1 }
   0xd   : > { %p566_p10 = scmp.lt.s32.totalorder %s700_s21, 2  ;;  %s187_s7 = sand.u32 1, %s696_s20  }
   0xe   : > { %p787_p11 = por %p149_p7, %p35_p0  ;;  %p791_p12 = por %p155_p8, %p41_p3 }
   0xf   : > { %s538_s8 = sshll.u32 %s700_s21, 7  ;;  %s524_s9 = sshll.u32 %s187_s7, 3 }
  0x10   : > { %s923_s30 = scalar_select %p787_p11, 1, 0 }
  0x11   : > { %s924_s6 = scalar_select %p791_p12, 1, 0 }
  0x12   : > { %s800_s12 = scalar_lea.hbm %s914_s0, %s538_s8  ;;  %s191_s13 = scalar_lea.vmem [#allocation2], %s524_s9 }
  0x13   : > { %s199_s14 = sshll.u32 %s191_s13, 4  ;;  %p804_p13 = pnand %p566_p10, %p776_p5  ;;  %s808_s14 = int_to_ptr.vmem [resolvable:$true] %s199_s14 }
  0x14   : > { %s188_s16 = scalar_lea.sflag [#allocation3], %s187_s7  ;;  %s604_s17 = scalar_lea.hbm %s800_s12, 128 }
  0x15   : > { %p605_p2 = scmp.ne.s32.totalorder %s800_s12, %s604_s17  ;;  %p606_p3 = pneg %p804_p13 }
  0x16   : > { %s609_s26 = scalar_lea.hbm %s914_s0, 256  ;;  %p610_p5 = scmp.lt.u32.totalorder %s800_s12, %s914_s0 }
  0x17   : > { %p607_p4 = pnand %p606_p3, %p605_p2  ;;  %p611_p8 = scmp.lt.u32.totalorder %s609_s26, %s604_s17 }
  0x18   : > { %p613_p9 = scmp.lt.u32.totalorder %s604_s17, %s800_s12 }
  0x19   : > { %p608_p7 = pneg %p607_p4  ;;  %p612_p10 = por %p611_p8, %p610_p5 }
  0x1b   : > { %p614_p0 = por %p613_p9, %p612_p10 }
  0x1d   : > { %p615_p1 = pnand %p614_p0, %p608_p7 }
  0x1f   : > { %618 = shalt.err (!%p615_p1)
}
  0x20   : > { %s619_s7 = scalar_lea.vmem %s808_s14, 128  ;;  %s702_s9 = smov [#allocation2]  }
  0x21   : > { %p620_p2 = scmp.ne.s32.totalorder %s808_s14, %s619_s7  ;;  %s624_s10 = sshll.u32 %s702_s9, 4  ;;  %s625_s10 = int_to_ptr.vmem [resolvable:$false] %s624_s10 }
  0x22   : > { %s626_s11 = scalar_lea.vmem %s625_s10, 256  ;;  %p627_p11 = scmp.lt.s32.totalorder %s808_s14, %s625_s10 }
  0x23   : > { %p622_p4 = pnand %p620_p2, %p606_p3  ;;  %p628_p5 = scmp.lt.s32.totalorder %s626_s11, %s619_s7 }
  0x25   : > { %p623_p12 = pneg %p622_p4  ;;  %p629_p8 = por %p628_p5, %p627_p11 }
  0x27   : > { %p630_p9 = pnand %p629_p8, %p623_p12 }
  0x29   : > { %633 = shalt.err (!%p630_p9)
}
  0x2a   : > { %561 = dma.hbm_to_vmem [thread:$0]  (!%p804_p13), %s800_s12, 128, %s808_s14, %s188_s16  }
  0x2b   : > { %p926_p0 = scmp.lt.s32.totalorder %s700_s21, 3  ;;  %p927_p1 = scmp.ge.s32.totalorder %s700_s21, 1 }
  0x2d   : > { %p205_p3 = pnand %p927_p1, %p926_p0 }
  0x2e   : > { %s842_s13 = sand.u32 (!%p205_p3), 1, %s692_s19  }
  0x2f   : > { %208 = sbr.rel (%p205_p3) target bundleno = 780 (0x30c), region = 40  ;;  %s528_s17 = sshll.u32 (!%p205_p3), %s842_s13, 3 }
  0x30   : > { %s211_s23 = scalar_lea.sflag (!%p205_p3), [#allocation3], %s842_s13  ;;  %s214_s15 = scalar_lea.vmem (!%p205_p3), [#allocation2], %s528_s17 }
  0x36   : > { %679 = dma.done.wait (%p780_p6), %s211_s23, 128  }
  0x37   : > { %681 = vsyncadd (%p780_p6), %s211_s23, 4294967168  ;;  %vm245_vm0 = vcmask 1043456   ;;  %v241_v0 = vld [vmem:[%s214_s15] sm:$0xff]  ;;  %v703_v5 = vmov 0.0   ;;  %vm704_vm1 = vmmov 0   ;;  %v255_v7 = vlaneseq  ;;  %s539_s7 = sshll.u32 %s758_s22, 7 }
  0x38   : > { %v243_v1 = vcombine.high %v241_v0, %v241_v0  ;;  %v246_v2 = vsel %vm245_vm0, %v241_v0, 0.0  ;;  %544 = vmatprep.subr.mxu0 %v703_v5  ;;  %v252_v6 = vld [vmem:[%s915_s1] sm:$0xf]  ;;  %549 = vmatprep.subr.mxu1 %v703_v5  ;;  %vm261_vm2 = vcmask 31744   ;;  %vm340_vm3 = vcmask 64512   ;;  %s240_s9 = scalar_lea.vmem [#allocation5], %s528_s17  ;;  %s870_s15 = scalar_lea.hbm %s919_s5, %s539_s7 }
  0x39   : > { %545 = vmatpush3.msk.msra.mxu0 %vm245_vm0, %v252_v6  ;;  %546 = vmatprep.mubr.msk.f32.mxu0 %vm704_vm1, %v703_v5  ;;  %v256_v8 = vand.u32 127, %v255_v7  ;;  %v258_v9 = vshrl.u32 %v255_v7, 7  ;;  %v338_v14 = vld [vmem:[%s917_s3] sm:$0xff]  ;;  %v705_v30 = vmov 839922192   ;;  %s451_s10 = sshll.u32 %s240_s9, 4  ;;  %s872_s10 = int_to_ptr.vmem [resolvable:$true] %s451_s10 }
  0x3a   : > { %v247_v3 = vsel %vm245_vm0, %v243_v1, 0.0  ;;  %551 = vmatprep.mubr.msk.f32.mxu1 %vm704_vm1, %v703_v5  ;;  %550 = vmatpush3.msra.mxu1 %v338_v14  ;;  %v253_v15 = vld [vmem:[%s916_s2] sm:$0x1]  ;;  %v427_v31 = vunpack.c.l.s4 %v705_v30  ;;  %s437_s12 = scalar_lea.sflag [#allocation4], %s842_s13  ;;  %s634_s14 = scalar_lea.vmem %s872_s10, 128 }
  0x3b   : > { %v248_v4 = vadd.f32 %v247_v3, %v246_v2  ;;  %v259_v10 = vsub.s32 %v256_v8, %v258_v9  ;;  %v339_v20 = vld [vmem:[%s918_s4] sm:$0x1]  ;;  %v420_v27 = vsub.s32 0, %v258_v9  ;;  %p635_p6 = scmp.ne.s32.totalorder %s872_s10, %s634_s14  ;;  %p928_p11 = scmp.ne.s32.totalorder %s923_s30, 0 }
  0x3c   : > { %v428_v32 = vunpack.c.0.s8 %v427_v31  ;;  %s706_s22 = smov [#allocation5]  }
  0x3d   : > { %249 = vadd.xlane.f32.xlu0 %v248_v4  ;;  %p636_p12 = pnand %p635_p6, %p928_p11  ;;  %s638_s17 = sshll.u32 %s706_s22, 4  ;;  %s639_s17 = int_to_ptr.vmem [resolvable:$false] %s638_s17 }
  0x3e   : > { %v431_v33 = vsub.s32 %v428_v32, %v258_v9  ;;  %s640_s29 = scalar_lea.vmem %s639_s17, 256  ;;  %p641_p7 = scmp.lt.s32.totalorder %s872_s10, %s639_s17 }
  0x3f   : > { %p637_p13 = pneg %p636_p12  ;;  %p642_p10 = scmp.lt.s32.totalorder %s640_s29, %s634_s14 }
  0x41   : > { %p643_p2 = por %p642_p10, %p641_p7 }
  0x43   : > { %p644_p4 = pnand %p643_p2, %p637_p13 }
  0xca   : > { %v250_v11 = vpop.xlane.xlu0 %249 }
  0xcb   : > { %v251_v12 = vmul.f32 0.00390625, %v250_v11 }
  0xcd   : > { %v260_v13 = vrot.slane %v251_v12, %v259_v10 }
  0xcf   : > { %547 = vmatmul.mubr.msk.f32.vlgmr.msra.gmra.mrb[0].mxu0 %vm261_vm2, %v260_v13 }
 0x1a2   : > { %v333_v16 = vpop.f32.mrb[0].mxu0 }
 0x1a3   : > { %v334_v17 = vadd.f32 %v333_v16, %v253_v15  ;;  %v548_v18 = vpop.f32.mrb[1].mxu0 }
 0x1a5   : > { %v337_v19 = vmax.f32 %v334_v17, 0.0 }
 0x1a7   : > { %552 = vmatmul.mubr.msk.f32.vlgmr.msra.gmra.mrb[0].mxu1 %vm340_vm3, %v337_v19 }
 0x27a   : > { %v410_v21 = vpop.f32.mrb[0].mxu1 }
 0x27b   : > { %v411_v22 = vadd.f32 %v410_v21, %v339_v20  ;;  %v553_v23 = vpop.f32.mrb[1].mxu1 }
 0x27d   : > { %v414_v24 = vadd.f32 3.0, %v411_v22 }
 0x27f   : > { %v415_v25 = vmax.f32 %v414_v24, 0.0 }
 0x281   : > { %v416_v26 = vmin.f32 %v415_v25, 6.0 }
 0x283   : > { %v417_v28 = vmul.f32 0.16666667, %v416_v26 }
 0x285   : > { %v421_v29 = vrot.slane %v417_v28, %v420_v27 }
 0x287   : > { %423 = vbcast.lane.b32.xlu0 %v421_v29, 256 }
 0x2f9   : > { %v424_v34 = vpop.permute.xlu0 %423 }
 0x2fa   : > { %v432_v35 = vrot.slane %v424_v34, %v431_v33 }
 0x2fc   : > { %v434_v36 = vmul.f32 %v432_v35, %v241_v0 }
 0x2fe   : > { %435 = vst [vmem:[%s240_s9] sm:$0xff] %v434_v36 }
 0x2ff   : > { %647 = shalt.err (!%p644_p4)
}
 0x300   : > { %s648_s13 = scalar_lea.hbm %s870_s15, 128  ;;  %s652_s26 = scalar_lea.hbm %s919_s5, 256 }
 0x301   : > { %p649_p5 = scmp.ne.s32.totalorder %s870_s15, %s648_s13  ;;  %p653_p0 = scmp.lt.u32.totalorder %s870_s15, %s919_s5 }
 0x302   : > { %p654_p1 = scmp.lt.u32.totalorder %s652_s26, %s648_s13  ;;  %p656_p6 = scmp.lt.u32.totalorder %s648_s13, %s870_s15 }
 0x303   : > { %p650_p8 = pnand %p649_p5, %p928_p11 }
 0x304   : > { %p655_p3 = por %p654_p1, %p653_p0 }
 0x305   : > { %p651_p9 = pneg %p650_p8 }
 0x306   : > { %p657_p12 = por %p656_p6, %p655_p3 }
 0x308   : > { %p658_p13 = pnand %p657_p12, %p651_p9 }
 0x30a   : > { %661 = shalt.err (!%p658_p13)
}
 0x30b   : > { %556 = dma.vmem_to_hbm [thread:$0]  (%p928_p11), %s872_s10, 128, %s870_s15, %s437_s12  }
 0x30c PF: > { %s463_s7 = sand.u32 1, %s688_s18   ;;  %p929_p7 = scmp.ne.s32.totalorder %s924_s6, 0 }
 0x30d   : > { %p930_p10 = scmp.ge.s32.totalorder %s700_s21, 2  ;;  %s464_s9 = scalar_lea.sflag [#allocation4], %s463_s7 }
 0x30f   : > { %p563_p2 = pnand %p930_p10, %p929_p7 }
 0x311   : > { %683 = dma.done.wait (!%p563_p2), %s464_s9, 128  }
 0x312   : > { %685 = vsyncadd (!%p563_p2), %s464_s9, 4294967168  ;;  %p18_p4 = scmp.ge.s32.totalorder %s762_s24, 4   ;;  %s931_s18 = smov %s692_s19 }
 0x313   : > { %s932_s19 = smov %s696_s20  ;;  %s933_s20 = smov %s774_s27 }
 0x314   : > { %s934_s21 = smov %s762_s24  ;;  %20 = sbr.rel (!%p18_p4) target bundleno = 5 (0x5), region = 85 }
 0x31b   :  { %469 = vsyncpa [#allocation3], 1 }
 0x31c   :  { %471 = vsyncpa [#allocation3 + $0x1], 1 }
 0x31d   :  { %472 = vsyncpa [#allocation4], 1 }
 0x31e   :  { %474 = vsyncpa [#allocation4 + $0x1], 1 }

</bundles_post_ra>
